<compile_context>
chip_gen: v7x
topology: tpu7x:2x2x1
jax: 0.10.0
libtpu: 0.0.40
codegen_flags: <defaults>
</compile_context>

<pallas_src>
import functools
import math

import jax
import jax.numpy as jnp
from jax.experimental import pallas as pl
from jax.experimental.pallas import tpu as pltpu

_LANE = 128
_ROW_ALIGN = 16          # tiled block sublane dim multiple of 16 -> aligned Box-Muller halves
_BLOCK_ROWS = 4096       # 4096 * 128 * 4 B = 2 MiB per f32 block
_TWO_PI = 2.0 * math.pi


def _add_noise_prng_kernel(seed_ref, x_ref, o_ref, *, mean, stddev):
    """out = x + Normal(mean, stddev), noise generated in-kernel (HW PRNG + Box-Muller).

    One PRNG draw per element; each (u1, u2) pair produces BOTH z0 = r*cos(theta)
    and z1 = r*sin(theta), written directly to the two output halves (no temp).
    """
    # Per-tile seeding: a constant seed would repeat the same noise in every tile.
    pltpu.prng_seed(seed_ref[0], pl.program_id(0))

    br, lanes = x_ref.shape
    h = br // 2  # br is even by construction in the wrapper

    bits = pltpu.prng_random_bits((br, lanes))
    if bits.dtype != jnp.dtype("uint32"):        # trace-time guard; no-op on current jax
        bits = pltpu.bitcast(bits, jnp.uint32)

    # Mantissa trick: uniform in [1, 2), then -1 -> [0, 1); avoids int->float converts.
    fbits = jnp.bitwise_or(jnp.right_shift(bits, 9), jnp.uint32(0x3F800000))
    u = pltpu.bitcast(fbits, jnp.float32) - 1.0  # [0, 1)

    u1 = 1.0 - u[:h]                             # (0, 1]: log() is safe
    u2 = u[h:]
    r = stddev * jnp.sqrt(-2.0 * jnp.log(u1))    # stddev folded in once, reused by both halves
    theta = _TWO_PI * u2
    z0 = r * jnp.cos(theta)
    z1 = r * jnp.sin(theta)
    if mean != 0.0:                              # static fold (mean baked via functools.partial)
        z0 = z0 + mean
        z1 = z1 + mean

    # Write the two halves straight to the output block (no concatenate temp).
    o_ref[:h, :] = (x_ref[:h, :].astype(jnp.float32) + z0).astype(o_ref.dtype)
    o_ref[h:, :] = (x_ref[h:, :].astype(jnp.float32) + z1).astype(o_ref.dtype)


def _add_noise_precomputed_kernel(x_ref, z_ref, o_ref, *, mean, stddev):
    """Fallback (non-TPU / interpret): add precomputed standard-normal noise."""
    noise = mean + stddev * z_ref[...]
    o_ref[...] = (x_ref[...].astype(jnp.float32) + noise).astype(o_ref.dtype)


def _choose_block_rows(rows, block_rows):
    """Block rows: <= block_rows, multiple of 16 when tiled, and >= 4 grid steps
    for larger tensors (v7x has 2 TensorCores sharing the 'parallel' grid)."""
    if rows < 4 * _ROW_ALIGN:
        return rows                                  # tiny tensor: one full-array block
    target = min(block_rows, pl.cdiv(rows, 4))       # aim for at least 4 grid steps
    return max(_ROW_ALIGN, (target // _ROW_ALIGN) * _ROW_ALIGN)


def add_noise(x, seed, *, mean=0.0, stddev=0.1, training=True, block_rows=_BLOCK_ROWS):
    """Pallas-backed AddNoise.forward. `x` is NCHW (any shape); pure elementwise."""
    if not training:
        return x

    orig_shape = x.shape
    dtype = x.dtype
    n = math.prod(orig_shape)

    # Lane-dense 2-D view (rows, 128); rows forced even so the Box-Muller halves
    # split cleanly. Pad/slice only triggers when n % 256 != 0 (never for typical
    # UNet feature maps), so the kernel normally stays a single HBM pass.
    rows = 2 * pl.cdiv(n, 2 * _LANE)
    padded = rows * _LANE

    flat = x.reshape(-1)
    if padded != n:
        flat = jnp.pad(flat, (0, padded - n))
    x2d = flat.reshape(rows, _LANE)

    br = _choose_block_rows(rows, block_rows)
    grid = (pl.cdiv(rows, br),)
    block = pl.BlockSpec((br, _LANE), lambda i: (i, 0))

    # Note: trace-time backend check; HW PRNG primitives have no CPU/interpret lowering.
    if jax.default_backend() == "tpu":
        seed_arr = jnp.asarray([seed], dtype=jnp.int32)
        kernel = functools.partial(
            _add_noise_prng_kernel, mean=float(mean), stddev=float(stddev))
        out2d = pl.pallas_call(
            kernel,
            out_shape=jax.ShapeDtypeStruct((rows, _LANE), dtype),
            grid=grid,
            in_specs=[
                pl.BlockSpec(memory_space=pltpu.MemorySpace.SMEM),  # scalar seed
                block,
            ],
            out_specs=block,
            input_output_aliases={1: 0},                            # out aliases x
            compiler_params=pltpu.CompilerParams(
                dimension_semantics=("parallel",),                  # megacore split (v7x)
                vmem_limit_bytes=32 * 1024 * 1024,                  # safe on v5e/v6e/v7x
            ),
        )(seed_arr, x2d)
    else:
        z2d = jax.random.normal(jax.random.PRNGKey(seed), (rows, _LANE), dtype=jnp.float32)
        kernel = functools.partial(
            _add_noise_precomputed_kernel, mean=float(mean), stddev=float(stddev))
        out2d = pl.pallas_call(
            kernel,
            out_shape=jax.ShapeDtypeStruct((rows, _LANE), dtype),
            grid=grid,
            in_specs=[block, block],
            out_specs=block,
        )(x2d, z2d)

    out = out2d.reshape(-1)
    if padded != n:
        out = out[:n]
    return out.reshape(orig_shape)


if __name__ == "__main__":
    key = jax.random.PRNGKey(0)
    # Small NCHW input consistent with a UNet feature map.
    x = jax.random.normal(key, (2, 4, 16, 16), dtype=jnp.float32)

    mean, stddev = 0.0, 0.1

    # Training path: adds Gaussian noise.
    y_train = jax.block_until_ready(
        add_noise(x, seed=42, mean=mean, stddev=stddev, training=True))

    # Eval path: identity.
    y_eval = jax.block_until_ready(
        add_noise(x, seed=42, mean=mean, stddev=stddev, training=False))

    assert y_train.shape == x.shape and y_train.dtype == x.dtype
    assert bool(jnp.all(jnp.isfinite(y_train)))
    assert jnp.array_equal(y_eval, x)

    # Sanity: the added noise is roughly Normal(mean, stddev).
    noise = (y_train - x).reshape(-1)
    assert abs(float(noise.mean()) - mean) < 0.05
    assert abs(float(noise.std()) - stddev) < 0.05

    print("KERNEL_OK")
</pallas_src>

<mosaic_0001>
module attributes {stable_mosaic.version = 11 : i64} {
  func.func @_add_noise_precomputed_kernel(%arg0: i32, %arg1: memref<16x128xf32, #tpu.memory_space<vmem>>, %arg2: memref<16x128xf32, #tpu.memory_space<vmem>>, %arg3: memref<16x128xf32, #tpu.memory_space<vmem>>) attributes {dimension_semantics = [#tpu.dimension_semantics<arbitrary>], iteration_bounds = array<i64: 1>, scalar_prefetch = 0 : i64, scratch_operands = 0 : i64, tpu.core_type = #tpu.core_type<tc>, window_params = [{transform_indices = @transform_0, window_bounds = array<i64: 16, 128>}, {transform_indices = @transform_1, window_bounds = array<i64: 16, 128>}, {transform_indices = @transform_2, window_bounds = array<i64: 16, 128>}]} {
    %c0 = arith.constant 0 : index
    %c0_0 = arith.constant 0 : index
    %0 = vector.load %arg2[%c0, %c0_0] : memref<16x128xf32, #tpu.memory_space<vmem>>, vector<16x128xf32>
    %cst = arith.constant 1.000000e-01 : f32
    %1 = vector.broadcast %cst : f32 to vector<16x128xf32>
    %2 = arith.mulf %1, %0 : vector<16x128xf32>
    %cst_1 = arith.constant 0.000000e+00 : f32
    %3 = vector.broadcast %cst_1 : f32 to vector<16x128xf32>
    %4 = arith.addf %3, %2 : vector<16x128xf32>
    %c0_2 = arith.constant 0 : index
    %c0_3 = arith.constant 0 : index
    %5 = vector.load %arg1[%c0_2, %c0_3] : memref<16x128xf32, #tpu.memory_space<vmem>>, vector<16x128xf32>
    %6 = arith.addf %5, %4 : vector<16x128xf32>
    %c0_4 = arith.constant 0 : index
    %c0_5 = arith.constant 0 : index
    %7 = vector.load %arg3[%c0_4, %c0_5] : memref<16x128xf32, #tpu.memory_space<vmem>>, vector<16x128xf32>
    tpu.vector_store %arg3[%c0_4, %c0_5], %6 {strides = array<i32>} : memref<16x128xf32, #tpu.memory_space<vmem>>, vector<16x128xf32>,
    return
  }
  func.func @transform_0(%arg0: i32) -> (i32, i32) {
    %c0_i32 = arith.constant 0 : i32
    %c0_i32_0 = arith.constant 0 : i32
    return %arg0, %c0_i32 : i32, i32
  }
  func.func @transform_1(%arg0: i32) -> (i32, i32) {
    %c0_i32 = arith.constant 0 : i32
    %c0_i32_0 = arith.constant 0 : i32
    return %arg0, %c0_i32 : i32, i32
  }
  func.func @transform_2(%arg0: i32) -> (i32, i32) {
    %c0_i32 = arith.constant 0 : i32
    %c0_i32_0 = arith.constant 0 : i32
    return %arg0, %c0_i32 : i32, i32
  }
}

</mosaic_0001>

<bundles_post_ra>
// kernel: tpu_custom_call.1
= control target key start
LH: loop header
LB: loop body
LE: loop exit
PB: predicated region body
PF: predicated region fallthrough
CT: control target
= control target key end

     0   :  { %7 = vsyncpa [#allocation3], 0  ;;  %s212_s0 = inlined_call_operand.hbm [shape: f32[16,128], index: 0, kind: input, shape index: {}]   ;;  %s213_s1 = inlined_call_operand.hbm [shape: f32[16,128], index: 1, kind: input, shape index: {}]   ;;  %s214_s2 = inlined_call_operand.hbm [shape: f32[16,128], index: 2, kind: output, shape index: {}]  }
   0x1   :  { %8 = vsyncpa [#allocation6], 0 }
   0x2   :  { %9 = vsyncpa [#allocation4], 0  ;;  %s147_s9 = smov [#allocation2]   ;;  %s75_s13 = scalar_lea.hbm %s212_s0, 256 }
   0x3   :  { %s15_s10 = sshll.u32 %s147_s9, 4  ;;  %p76_p0 = scmp.ne.s32.totalorder %s212_s0, %s75_s13  ;;  %s16_s10 = int_to_ptr.vmem [resolvable:$true] %s15_s10 }
   0x4   :  { %p79_p1 = scmp.lt.u32.totalorder %s75_s13, %s212_s0 }
   0x6   :  { %p81_p2 = pnand %p79_p1, %p76_p0 }
   0x8   :  { %84 = shalt.err (!%p81_p2)
}
   0x9   :  { %s85_s18 = scalar_lea.vmem %s16_s10, 256  ;;  %p90_p4 = scmp.lt.s32.totalorder %s16_s10, %s16_s10 }
   0xa   :  { %p86_p3 = scmp.ne.s32.totalorder %s16_s10, %s85_s18  ;;  %p91_p5 = scmp.lt.s32.totalorder %s85_s18, %s85_s18 }
   0xc   :  { %p92_p6 = por %p91_p5, %p90_p4 }
   0xe   :  { %p93_p7 = pnand %p92_p6, %p86_p3 }
  0x10   :  { %96 = shalt.err (!%p93_p7)
}
  0x11   :  { %s148_s19 = smov 128   ;;  %s149_s20 = smov 8  }
  0x12   :  { %21 = dma.hbm_to_vmem [thread:$0]  %s212_s0, 256, %s16_s10, [#allocation3], %s148_s19, %s148_s19, %s149_s20  }
  0x13   :  { %s150_s23 = smov [#allocation5]   ;;  %s97_s27 = scalar_lea.hbm %s213_s1, 256 }
  0x14   :  { %s27_s24 = sshll.u32 %s150_s23, 4  ;;  %p98_p8 = scmp.ne.s32.totalorder %s213_s1, %s97_s27  ;;  %s28_s24 = int_to_ptr.vmem [resolvable:$true] %s27_s24 }
  0x15   :  { %p101_p9 = scmp.lt.u32.totalorder %s97_s27, %s213_s1 }
  0x17   :  { %p103_p10 = pnand %p101_p9, %p98_p8 }
  0x19   :  { %106 = shalt.err (!%p103_p10)
}
  0x1a   :  { %s107_s4 = scalar_lea.vmem %s28_s24, 256  ;;  %p112_p12 = scmp.lt.s32.totalorder %s28_s24, %s28_s24 }
  0x1b   :  { %p108_p11 = scmp.ne.s32.totalorder %s28_s24, %s107_s4  ;;  %p113_p13 = scmp.lt.s32.totalorder %s107_s4, %s107_s4 }
  0x1d   :  { %p114_p0 = por %p113_p13, %p112_p12 }
  0x1f   :  { %p115_p1 = pnand %p114_p0, %p108_p11 }
  0x21   :  { %118 = shalt.err (!%p115_p1)
}
  0x22   :  { %33 = dma.hbm_to_vmem [thread:$0]  %s213_s1, 256, %s28_s24, [#allocation6], %s148_s19, %s148_s19, %s149_s20  }
  0x23   :  { %141 = dma.done.wait [#allocation3], 256  }
  0x24   :  { %142 = vsyncadd [#allocation3], 4294967040 }
  0x25   :  { %143 = dma.done.wait [#allocation6], 256  }
  0x26   :  { %144 = vsyncadd [#allocation6], 4294967040  ;;  %v40_v0 = vld [vmem:[#allocation5] sm:$0xff]  ;;  %v46_v1 = vld [vmem:[#allocation2] sm:$0xff]  ;;  %s151_s6 = smov [#allocation7]  }
  0x27   :  { %v41_v2 = vld [vmem:[#allocation5 + $0x8] sm:$0xff]  ;;  %s57_s7 = sshll.u32 %s151_s6, 4  ;;  %v42_v3 = vmul.f32 0.1, %v40_v0  ;;  %v47_v5 = vld [vmem:[#allocation2 + $0x8] sm:$0xff]  ;;  %s58_s7 = int_to_ptr.vmem [resolvable:$true] %s57_s7 }
  0x28   :  { %v43_v4 = vmul.f32 0.1, %v41_v2  ;;  %s119_s8 = scalar_lea.vmem %s58_s7, 256  ;;  %p124_p3 = scmp.lt.s32.totalorder %s58_s7, %s58_s7 }
  0x29   :  { %v48_v6 = vadd.f32 %v46_v1, %v42_v3  ;;  %p120_p2 = scmp.ne.s32.totalorder %s58_s7, %s119_s8  ;;  %p125_p4 = scmp.lt.s32.totalorder %s119_s8, %s119_s8 }
  0x2a   :  { %v49_v7 = vadd.f32 %v47_v5, %v43_v4 }
  0x2b   :  { %50 = vst [vmem:[#allocation7] sm:$0xff] %v48_v6  ;;  %p126_p5 = por %p125_p4, %p124_p3 }
  0x2c   :  { %51 = vst [vmem:[#allocation7 + $0x8] sm:$0xff] %v49_v7 }
  0x2d   :  { %p127_p6 = pnand %p126_p5, %p120_p2 }
  0x2f   :  { %130 = shalt.err (!%p127_p6)
}
  0x30   :  { %s131_s10 = scalar_lea.hbm %s214_s2, 256 }
  0x31   :  { %p132_p7 = scmp.ne.s32.totalorder %s214_s2, %s131_s10  ;;  %p135_p8 = scmp.lt.u32.totalorder %s131_s10, %s214_s2 }
  0x33   :  { %p137_p9 = pnand %p135_p8, %p132_p7 }
  0x35   :  { %140 = shalt.err (!%p137_p9)
}
  0x36   :  { %63 = dma.vmem_to_hbm [thread:$0]  %s58_s7, 256, %s214_s2, [#allocation4], %s148_s19, %s148_s19, %s149_s20  }
  0x37   :  { %145 = dma.done.wait [#allocation4], 256  }
  0x38   :  { %146 = vsyncadd [#allocation4], 4294967040 }
  0x39   :  { %67 = vsyncpa [#allocation3], 1 }
  0x3a   :  { %68 = vsyncpa [#allocation6], 1 }
  0x3b   :  { %69 = vsyncpa [#allocation4], 1 }

</bundles_post_ra>
